<compile_context>
chip_gen: v7x
topology: tpu7x:2x2x1
jax: 0.10.0
libtpu: 0.0.40
codegen_flags: <defaults>
</compile_context>

<pallas_src>
import functools

import jax
import jax.numpy as jnp
from jax.experimental import pallas as pl
from jax.experimental.pallas import tpu as pltpu

# Lane-aligned (padded) layer widths.
H1 = 128            # fc1: 120 -> 128
H2 = 128            # fc2:  84 -> 128
_TILE_B_CAP = 1024  # per review: big tiles amortize ~0.35us/step; working set << VMEM
_SUBLANE = 16       # bf16 sublane packing (also valid for f32/int32 tiles)


def _cdiv(a, b):
    return (a + b - 1) // b


def _round_up(n, m):
    return _cdiv(n, m) * m


def _tiling(B, tile_b):
    """Balanced batch tiles: at most _SUBLANE-1 padded rows in the last tile."""
    if tile_b is None:
        tile_b = _cdiv(B, _cdiv(B, _TILE_B_CAP))
    tile_b = max(_SUBLANE, _round_up(min(tile_b, _round_up(B, _SUBLANE)), _SUBLANE))
    return tile_b, _cdiv(B, tile_b)


def _batch_semantics(num_tiles):
    """CORE_PARALLEL on v7x multi-tile grids (2 TCs/chip); 'parallel' otherwise."""
    try:
        kind = jax.devices()[0].device_kind.lower()
    except Exception:  # pragma: no cover - defensive
        kind = ""
    if num_tiles >= 2 and "7" in kind and hasattr(pltpu, "CORE_PARALLEL"):
        return (pltpu.CORE_PARALLEL,)
    return ("parallel",)


def _q_tile(x_ref, w1_ref, b1_ref, w2_ref, b2_ref, w3_ref, b3_ref):
    """Shared compute: (tile_b, in_dim) f32 obs tile -> (tile_b, out_pad) f32 Q tile."""
    x = x_ref[...]  # f32 (preprocess_obs_fn already applied in the wrapper)
    # fc1 + ReLU: fully f32 (K = in_dim is tiny; avoids bf16 observation quantization).
    h1 = jnp.dot(x, w1_ref[...], preferred_element_type=jnp.float32) + b1_ref[...]
    h1 = jnp.maximum(h1, 0.0).astype(jnp.bfloat16)
    # fc2 + ReLU: bf16 MXU feed, f32 accumulation, f32 bias/ReLU.
    h2 = jnp.dot(h1, w2_ref[...], preferred_element_type=jnp.float32) + b2_ref[...]
    h2 = jnp.maximum(h2, 0.0).astype(jnp.bfloat16)
    # fc3 (no activation); padded output lanes are exactly zero (zero weights/bias).
    return jnp.dot(h2, w3_ref[...], preferred_element_type=jnp.float32) + b3_ref[...]


def _qvalues_kernel(x_ref, w1_ref, b1_ref, w2_ref, b2_ref, w3_ref, b3_ref, q_ref):
    q = _q_tile(x_ref, w1_ref, b1_ref, w2_ref, b2_ref, w3_ref, b3_ref)
    q_ref[...] = q.astype(q_ref.dtype)  # bf16 store: halves HBM writeback


def _act_kernel(x_ref, w1_ref, b1_ref, w2_ref, b2_ref, w3_ref, b3_ref, a_ref, *,
                out_dim):
    # Fused greedy argmax epilogue (act() path): argmax over the real action columns
    # computed on the f32 accumulator; only a (tile_b, 1) int32 column hits HBM.
    q = _q_tile(x_ref, w1_ref, b1_ref, w2_ref, b2_ref, w3_ref, b3_ref)
    col = jax.lax.broadcasted_iota(jnp.int32, q.shape, 1)
    qm = jnp.where(col < out_dim, q, -jnp.inf)
    row_max = jnp.max(qm, axis=1, keepdims=True)
    colf = col.astype(jnp.float32)
    # First column index achieving the row max (matches argmax tie-breaking).
    first = jnp.min(jnp.where(qm == row_max, colf, jnp.float32(q.shape[1])),
                    axis=1, keepdims=True)
    a_ref[...] = first.astype(jnp.int32)


def _specs(tile_b, in_dim, params, out_cols):
    resident = lambda i: (0, 0)  # weights/biases: same block every step -> stay in VMEM
    in_specs = [pl.BlockSpec((tile_b, in_dim), lambda i: (i, 0))]
    in_specs += [pl.BlockSpec(p.shape, resident) for p in params]
    out_spec = pl.BlockSpec((tile_b, out_cols), lambda i: (i, 0))
    return in_specs, out_spec


def qnetwork_forward(x, params, out_dim, *, tile_b=None):
    """x: (B, input_shape) numeric; returns (B, out_dim) bf16 Q-values."""
    w1, b1, w2, b2, w3, b3 = params
    B, in_dim = x.shape
    out_pad = w3.shape[1]
    x = x.astype(jnp.float32)  # preprocess_obs_fn: to-float (no-op if already f32)

    tile_b, num_tiles = _tiling(B, tile_b)
    in_specs, out_spec = _specs(tile_b, in_dim, params, out_pad)

    q = pl.pallas_call(
        _qvalues_kernel,
        out_shape=jax.ShapeDtypeStruct((B, out_pad), jnp.bfloat16),
        grid=(num_tiles,),
        in_specs=in_specs,
        out_specs=out_spec,
        compiler_params=pltpu.CompilerParams(
            dimension_semantics=_batch_semantics(num_tiles)),
    )(x, w1, b1, w2, b2, w3, b3)
    return q[:, :out_dim]


def qnetwork_act(x, params, out_dim, *, tile_b=None):
    """Fused act() path: returns (B,) int32 greedy actions, no Q-slab writeback."""
    w1, b1, w2, b2, w3, b3 = params
    B, in_dim = x.shape
    x = x.astype(jnp.float32)

    tile_b, num_tiles = _tiling(B, tile_b)
    in_specs, out_spec = _specs(tile_b, in_dim, params, 1)

    actions = pl.pallas_call(
        functools.partial(_act_kernel, out_dim=out_dim),
        out_shape=jax.ShapeDtypeStruct((B, 1), jnp.int32),
        grid=(num_tiles,),
        in_specs=in_specs,
        out_specs=out_spec,
        compiler_params=pltpu.CompilerParams(
            dimension_semantics=_batch_semantics(num_tiles)),
    )(x, w1, b1, w2, b2, w3, b3)
    return actions[:, 0]


def init_params(key, input_shape, output_shape):
    """PyTorch nn.Linear default init (U[-1/sqrt(fan_in), +1/sqrt(fan_in)]).
    Weights stored transposed (in, out), zero-padded to lane multiples.
    fc1 weight/bias stay f32 (observation fidelity); fc2/fc3 weights are bf16;
    all biases f32, shape (1, out_pad)."""
    def linear(k, fan_in, fan_out):
        kw, kb = jax.random.split(k)
        bound = 1.0 / jnp.sqrt(jnp.float32(fan_in))
        w = jax.random.uniform(kw, (fan_in, fan_out), jnp.float32, -bound, bound)
        b = jax.random.uniform(kb, (1, fan_out), jnp.float32, -bound, bound)
        return w, b

    def pad_wb(w, b, k_pad, n_pad, w_dtype):
        fan_in, fan_out = w.shape
        w = jnp.pad(w, ((0, k_pad - fan_in), (0, n_pad - fan_out))).astype(w_dtype)
        b = jnp.pad(b, ((0, 0), (0, n_pad - fan_out)))  # f32
        return w, b

    out_pad = _round_up(output_shape, 128)
    k1, k2, k3 = jax.random.split(key, 3)
    w1, b1 = pad_wb(*linear(k1, input_shape, 120), input_shape, H1, jnp.float32)
    w2, b2 = pad_wb(*linear(k2, 120, 84), H1, H2, jnp.bfloat16)
    w3, b3 = pad_wb(*linear(k3, 84, output_shape), H2, out_pad, jnp.bfloat16)
    return (w1, b1, w2, b2, w3, b3)


def qnetwork_reference(x, params, out_dim):
    """Pure-JAX reference mirroring the kernel math (f32 fc1, bf16 MXU feed fc2/fc3,
    f32 accumulation)."""
    w1, b1, w2, b2, w3, b3 = params
    x = x.astype(jnp.float32)
    h1 = jnp.maximum(jnp.dot(x, w1, preferred_element_type=jnp.float32) + b1, 0.0)
    h2 = jnp.maximum(jnp.dot(h1.astype(jnp.bfloat16), w2,
                             preferred_element_type=jnp.float32) + b2, 0.0)
    q = jnp.dot(h2.astype(jnp.bfloat16), w3, preferred_element_type=jnp.float32) + b3
    return q[:, :out_dim]


if __name__ == "__main__":
    # Small shapes consistent with the module: flat observation vector in, discrete
    # action-value vector out.
    batch = 2
    input_shape = 8      # env observation dim
    output_shape = 4     # number of discrete actions

    key = jax.random.PRNGKey(0)
    k_params, k_x, k_x2 = jax.random.split(key, 3)
    params = init_params(k_params, input_shape, output_shape)

    # Latency path: tiny batch, no pad op, single (partial) tile.
    x = jax.random.normal(k_x, (batch, input_shape), jnp.float32)
    q_values = jax.block_until_ready(qnetwork_forward(x, params, output_shape))
    ref = qnetwork_reference(x, params, output_shape)
    assert q_values.shape == (batch, output_shape)
    assert jnp.allclose(q_values.astype(jnp.float32), ref, atol=2e-2, rtol=2e-2), \
        "Q-value mismatch vs reference (B=2)"

    # Fused greedy-action path (act()): argmax computed in the kernel epilogue.
    actions = jax.block_until_ready(qnetwork_act(x, params, output_shape))
    assert actions.shape == (batch,)
    assert bool(jnp.all((actions >= 0) & (actions < output_shape)))
    picked = jnp.take_along_axis(ref, actions[:, None], axis=1)[:, 0]
    assert bool(jnp.all(picked >= jnp.max(ref, axis=1) - 5e-3)), \
        "fused argmax disagrees with reference greedy action"

    # Eval/train path: larger, non-tile-multiple batch exercising several batch tiles
    # (partial last tile, weights resident in VMEM across tiles).
    x_big = jax.random.normal(k_x2, (260, input_shape), jnp.float32)
    q_big = jax.block_until_ready(
        qnetwork_forward(x_big, params, output_shape, tile_b=128))
    ref_big = qnetwork_reference(x_big, params, output_shape)
    assert q_big.shape == (260, output_shape)
    assert jnp.allclose(q_big.astype(jnp.float32), ref_big, atol=2e-2, rtol=2e-2), \
        "Q-value mismatch vs reference (B=260)"

    print("KERNEL_OK")
</pallas_src>

<mosaic_0001>
module attributes {stable_mosaic.version = 11 : i64} {
  func.func @_qvalues_kernel(%arg0: i32, %arg1: memref<16x8xf32, #tpu.memory_space<vmem>>, %arg2: memref<8x128xf32, #tpu.memory_space<vmem>>, %arg3: memref<1x128xf32, #tpu.memory_space<vmem>>, %arg4: memref<128x128xbf16, #tpu.memory_space<vmem>>, %arg5: memref<1x128xf32, #tpu.memory_space<vmem>>, %arg6: memref<128x128xbf16, #tpu.memory_space<vmem>>, %arg7: memref<1x128xf32, #tpu.memory_space<vmem>>, %arg8: memref<16x128xbf16, #tpu.memory_space<vmem>>) attributes {dimension_semantics = [#tpu.dimension_semantics<parallel>], iteration_bounds = array<i64: 1>, scalar_prefetch = 0 : i64, scratch_operands = 0 : i64, tpu.core_type = #tpu.core_type<tc>, window_params = [{transform_indices = @transform_0, window_bounds = array<i64: 16, 8>}, {pipeline_mode = #tpu.pipeline_mode<synchronous>, transform_indices = @transform_1, window_bounds = array<i64: 8, 128>}, {pipeline_mode = #tpu.pipeline_mode<synchronous>, transform_indices = @transform_2, window_bounds = array<i64: 1, 128>}, {pipeline_mode = #tpu.pipeline_mode<synchronous>, transform_indices = @transform_3, window_bounds = array<i64: 128, 128>}, {pipeline_mode = #tpu.pipeline_mode<synchronous>, transform_indices = @transform_4, window_bounds = array<i64: 1, 128>}, {pipeline_mode = #tpu.pipeline_mode<synchronous>, transform_indices = @transform_5, window_bounds = array<i64: 128, 128>}, {pipeline_mode = #tpu.pipeline_mode<synchronous>, transform_indices = @transform_6, window_bounds = array<i64: 1, 128>}, {transform_indices = @transform_7, window_bounds = array<i64: 16, 128>}]} {
    %c0 = arith.constant 0 : index
    %c0_0 = arith.constant 0 : index
    %0 = vector.load %arg1[%c0, %c0_0] : memref<16x8xf32, #tpu.memory_space<vmem>>, vector<16x8xf32>
    %c0_1 = arith.constant 0 : index
    %c0_2 = arith.constant 0 : index
    %1 = vector.load %arg2[%c0_1, %c0_2] : memref<8x128xf32, #tpu.memory_space<vmem>>, vector<8x128xf32>
    %cst = arith.constant dense<0.000000e+00> : vector<16x128xf32>
    %2 = tpu.matmul %0, %1, %cst {dimension_numbers = #tpu.dot_dimension_numbers<[1], [0], [0], [1], [0, 0, 1, 1], [], []>} : vector<16x8xf32>, vector<8x128xf32>, vector<16x128xf32> -> vector<16x128xf32>
    %c0_3 = arith.constant 0 : index
    %c0_4 = arith.constant 0 : index
    %3 = vector.load %arg3[%c0_3, %c0_4] : memref<1x128xf32, #tpu.memory_space<vmem>>, vector<1x128xf32>
    %4 = vector.broadcast %3 : vector<1x128xf32> to vector<16x128xf32>
    %5 = arith.addf %2, %4 : vector<16x128xf32>
    %cst_5 = arith.constant 0.000000e+00 : f32
    %6 = vector.broadcast %cst_5 : f32 to vector<16x128xf32>
    %7 = arith.maximumf %5, %6 : vector<16x128xf32>
    %8 = arith.truncf %7 : vector<16x128xf32> to vector<16x128xbf16>
    %c0_6 = arith.constant 0 : index
    %c0_7 = arith.constant 0 : index
    %9 = vector.load %arg4[%c0_6, %c0_7] : memref<128x128xbf16, #tpu.memory_space<vmem>>, vector<128x128xbf16>
    %cst_8 = arith.constant dense<0.000000e+00> : vector<16x128xf32>
    %10 = tpu.matmul %8, %9, %cst_8 {dimension_numbers = #tpu.dot_dimension_numbers<[1], [0], [0], [1], [0, 0, 1, 1], [], []>} : vector<16x128xbf16>, vector<128x128xbf16>, vector<16x128xf32> -> vector<16x128xf32>
    %c0_9 = arith.constant 0 : index
    %c0_10 = arith.constant 0 : index
    %11 = vector.load %arg5[%c0_9, %c0_10] : memref<1x128xf32, #tpu.memory_space<vmem>>, vector<1x128xf32>
    %12 = vector.broadcast %11 : vector<1x128xf32> to vector<16x128xf32>
    %13 = arith.addf %10, %12 : vector<16x128xf32>
    %cst_11 = arith.constant 0.000000e+00 : f32
    %14 = vector.broadcast %cst_11 : f32 to vector<16x128xf32>
    %15 = arith.maximumf %13, %14 : vector<16x128xf32>
    %16 = arith.truncf %15 : vector<16x128xf32> to vector<16x128xbf16>
    %c0_12 = arith.constant 0 : index
    %c0_13 = arith.constant 0 : index
    %17 = vector.load %arg6[%c0_12, %c0_13] : memref<128x128xbf16, #tpu.memory_space<vmem>>, vector<128x128xbf16>
    %cst_14 = arith.constant dense<0.000000e+00> : vector<16x128xf32>
    %18 = tpu.matmul %16, %17, %cst_14 {dimension_numbers = #tpu.dot_dimension_numbers<[1], [0], [0], [1], [0, 0, 1, 1], [], []>} : vector<16x128xbf16>, vector<128x128xbf16>, vector<16x128xf32> -> vector<16x128xf32>
    %c0_15 = arith.constant 0 : index
    %c0_16 = arith.constant 0 : index
    %19 = vector.load %arg7[%c0_15, %c0_16] : memref<1x128xf32, #tpu.memory_space<vmem>>, vector<1x128xf32>
    %20 = vector.broadcast %19 : vector<1x128xf32> to vector<16x128xf32>
    %21 = arith.addf %18, %20 : vector<16x128xf32>
    %22 = arith.truncf %21 : vector<16x128xf32> to vector<16x128xbf16>
    %c0_17 = arith.constant 0 : index
    %c0_18 = arith.constant 0 : index
    %23 = vector.load %arg8[%c0_17, %c0_18] : memref<16x128xbf16, #tpu.memory_space<vmem>>, vector<16x128xbf16>
    tpu.vector_store %arg8[%c0_17, %c0_18], %22 {strides = array<i32>} : memref<16x128xbf16, #tpu.memory_space<vmem>>, vector<16x128xbf16>,
    return
  }
  func.func @transform_0(%arg0: i32) -> (i32, i32) {
    %c0_i32 = arith.constant 0 : i32
    %c0_i32_0 = arith.constant 0 : i32
    return %arg0, %c0_i32 : i32, i32
  }
  func.func @transform_1(%arg0: i32) -> (i32, i32) {
    %c0_i32 = arith.constant 0 : i32
    %c0_i32_0 = arith.constant 0 : i32
    %c0_i32_1 = arith.constant 0 : i32
    return %c0_i32, %c0_i32_0 : i32, i32
  }
  func.func @transform_2(%arg0: i32) -> (i32, i32) {
    %c0_i32 = arith.constant 0 : i32
    %c0_i32_0 = arith.constant 0 : i32
    %c0_i32_1 = arith.constant 0 : i32
    return %c0_i32, %c0_i32_0 : i32, i32
  }
  func.func @transform_3(%arg0: i32) -> (i32, i32) {
    %c0_i32 = arith.constant 0 : i32
    %c0_i32_0 = arith.constant 0 : i32
    %c0_i32_1 = arith.constant 0 : i32
    return %c0_i32, %c0_i32_0 : i32, i32
  }
  func.func @transform_4(%arg0: i32) -> (i32, i32) {
    %c0_i32 = arith.constant 0 : i32
    %c0_i32_0 = arith.constant 0 : i32
    %c0_i32_1 = arith.constant 0 : i32
    return %c0_i32, %c0_i32_0 : i32, i32
  }
  func.func @transform_5(%arg0: i32) -> (i32, i32) {
    %c0_i32 = arith.constant 0 : i32
    %c0_i32_0 = arith.constant 0 : i32
    %c0_i32_1 = arith.constant 0 : i32
    return %c0_i32, %c0_i32_0 : i32, i32
  }
  func.func @transform_6(%arg0: i32) -> (i32, i32) {
    %c0_i32 = arith.constant 0 : i32
    %c0_i32_0 = arith.constant 0 : i32
    %c0_i32_1 = arith.constant 0 : i32
    return %c0_i32, %c0_i32_0 : i32, i32
  }
  func.func @transform_7(%arg0: i32) -> (i32, i32) {
    %c0_i32 = arith.constant 0 : i32
    %c0_i32_0 = arith.constant 0 : i32
    return %arg0, %c0_i32 : i32, i32
  }
}

</mosaic_0001>

<bundles_post_ra>
// kernel: tpu_custom_call.1
= control target key start
LH: loop header
LB: loop body
LE: loop exit
PB: predicated region body
PF: predicated region fallthrough
CT: control target
= control target key end

     0   :  { %12 = vsyncpa [#allocation3], 0  ;;  %s878_s0 = inlined_call_operand.hbm [shape: f32[2,8], index: 0, kind: input, shape index: {}]   ;;  %s879_s1 = inlined_call_operand.hbm [shape: f32[8,128], index: 1, kind: input, shape index: {}]   ;;  %s880_s2 = inlined_call_operand.vmem [shape: f32[1,128], index: 2, kind: input, shape index: {}]   ;;  %s881_s3 = inlined_call_operand.hbm [shape: bf16[128,128], index: 3, kind: input, shape index: {}]   ;;  %s882_s4 = inlined_call_operand.vmem [shape: f32[1,128], index: 4, kind: input, shape index: {}]   ;;  %s883_s5 = inlined_call_operand.hbm [shape: bf16[128,128], index: 5, kind: input, shape index: {}]   ;;  %s884_s6 = inlined_call_operand.vmem [shape: f32[1,128], index: 6, kind: input, shape index: {}]   ;;  %s885_s7 = inlined_call_operand.hbm [shape: bf16[2,128], index: 7, kind: output, shape index: {}]  }
   0x1   :  { %13 = vsyncpa [#allocation6], 0 }
   0x2   :  { %14 = vsyncpa [#allocation9], 0 }
   0x3   :  { %15 = vsyncpa [#allocation4], 0 }
   0x4   :  { %20 = vsyncadd [#allocation3], 224  ;;  %s729_s24 = smov [#allocation5]   ;;  %s730_s26 = smov [#allocation2]  }
   0x5   :  { %s34_s25 = sshll.u32 %s729_s24, 4  ;;  %s21_s27 = sshll.u32 %s730_s26, 4  ;;  %s35_s25 = int_to_ptr.vmem [resolvable:$true] %s34_s25  ;;  %s783_s27 = int_to_ptr.vmem [resolvable:$true] %s21_s27 }
   0x6   :  { %s611_s30 = scalar_lea.hbm %s879_s1, 128 }
   0x7   :  { %p612_p0 = scmp.ne.s32.totalorder %s879_s1, %s611_s30  ;;  %p615_p1 = scmp.lt.u32.totalorder %s611_s30, %s879_s1 }
   0x9   :  { %p617_p2 = pnand %p615_p1, %p612_p0 }
   0xb   :  { %620 = shalt.err (!%p617_p2)
}
   0xc   :  { %s621_s12 = scalar_lea.vmem %s35_s25, 128  ;;  %p626_p4 = scmp.lt.s32.totalorder %s35_s25, %s35_s25 }
   0xd   :  { %p622_p3 = scmp.ne.s32.totalorder %s35_s25, %s621_s12  ;;  %p627_p5 = scmp.lt.s32.totalorder %s621_s12, %s621_s12 }
   0xf   :  { %p628_p6 = por %p627_p5, %p626_p4 }
  0x11   :  { %p629_p7 = pnand %p628_p6, %p622_p3 }
  0x13   :  { %632 = shalt.err (!%p629_p7)
}
  0x14   :  { %37 = dma.hbm_to_vmem [thread:$0]  %s879_s1, 128, %s35_s25, [#allocation6]  }
  0x15   :  { %s633_s17 = scalar_lea.hbm %s878_s0, 32 }
  0x16   :  { %p634_p8 = scmp.ne.s32.totalorder %s878_s0, %s633_s17  ;;  %p637_p9 = scmp.lt.u32.totalorder %s633_s17, %s878_s0 }
  0x18   :  { %p639_p10 = pnand %p637_p9, %p634_p8 }
  0x1a   :  { %642 = shalt.err (!%p639_p10)
}
  0x1b   :  { %s643_s22 = scalar_lea.vmem %s783_s27, 32  ;;  %s647_s1 = scalar_lea.vmem %s783_s27, 256 }
  0x1c   :  { %p644_p11 = scmp.ne.s32.totalorder %s783_s27, %s643_s22  ;;  %p648_p12 = scmp.lt.s32.totalorder %s783_s27, %s783_s27 }
  0x1d   :  { %p649_p13 = scmp.lt.s32.totalorder %s647_s1, %s643_s22 }
  0x1f   :  { %p650_p0 = por %p649_p13, %p648_p12 }
  0x21   :  { %p651_p1 = pnand %p650_p0, %p644_p11 }
  0x23   :  { %654 = shalt.err (!%p651_p1)
}
  0x24   :  { %s731_s23 = smov 32   ;;  %s732_s24 = smov 2  }
  0x25   :  { %27 = dma.hbm_to_vmem [thread:$0]  %s878_s0, 32, %s783_s27, [#allocation3], %s731_s23, %s731_s23, %s732_s24  }
  0x26   :  { %s733_s28 = smov [#allocation7]   ;;  %s655_s9 = scalar_lea.hbm %s881_s3, 1024 }
  0x27   :  { %s45_s29 = sshll.u32 %s733_s28, 4  ;;  %p656_p2 = scmp.ne.s32.totalorder %s881_s3, %s655_s9  ;;  %s46_s29 = int_to_ptr.vmem [resolvable:$true] %s45_s29 }
  0x28   :  { %p659_p3 = scmp.lt.u32.totalorder %s655_s9, %s881_s3 }
  0x2a   :  { %p661_p4 = pnand %p659_p3, %p656_p2 }
  0x2c   :  { %664 = shalt.err (!%p661_p4)
}
  0x2d   :  { %s665_s14 = scalar_lea.vmem %s46_s29, 1024  ;;  %p670_p6 = scmp.lt.s32.totalorder %s46_s29, %s46_s29 }
  0x2e   :  { %p666_p5 = scmp.ne.s32.totalorder %s46_s29, %s665_s14  ;;  %p671_p7 = scmp.lt.s32.totalorder %s665_s14, %s665_s14 }
  0x30   :  { %p672_p8 = por %p671_p7, %p670_p6 }
  0x32   :  { %p673_p9 = pnand %p672_p8, %p666_p5 }
  0x34   :  { %676 = shalt.err (!%p673_p9)
}
  0x35   :  { %s734_s0 = smov 64   ;;  %s735_s27 = smov 4  }
  0x36   :  { %51 = dma.hbm_to_vmem [thread:$0]  %s881_s3, 1024, %s46_s29, [#allocation6], %s734_s0, %s734_s0, %s735_s27  }
  0x37   :  { %s736_s17 = smov [#allocation8]   ;;  %s677_s21 = scalar_lea.hbm %s883_s5, 1024 }
  0x38   :  { %s59_s18 = sshll.u32 %s736_s17, 4  ;;  %p678_p10 = scmp.ne.s32.totalorder %s883_s5, %s677_s21  ;;  %s60_s18 = int_to_ptr.vmem [resolvable:$true] %s59_s18 }
  0x39   :  { %p681_p11 = scmp.lt.u32.totalorder %s677_s21, %s883_s5 }
  0x3b   :  { %p683_p12 = pnand %p681_p11, %p678_p10 }
  0x3d   :  { %686 = shalt.err (!%p683_p12)
}
  0x3e   :  { %s687_s25 = scalar_lea.vmem %s60_s18, 1024  ;;  %p692_p0 = scmp.lt.s32.totalorder %s60_s18, %s60_s18 }
  0x3f   :  { %p688_p13 = scmp.ne.s32.totalorder %s60_s18, %s687_s25  ;;  %p693_p1 = scmp.lt.s32.totalorder %s687_s25, %s687_s25 }
  0x41   :  { %p694_p2 = por %p693_p1, %p692_p0 }
  0x43   :  { %p695_p3 = pnand %p694_p2, %p688_p13 }
  0x45   :  { %698 = shalt.err (!%p695_p3)
}
  0x46   :  { %65 = dma.hbm_to_vmem [thread:$0]  %s883_s5, 1024, %s60_s18, [#allocation9], %s734_s0, %s734_s0, %s735_s27  }
  0x47   :  { %721 = dma.done.wait [#allocation3], 256  }
  0x48   :  { %722 = vsyncadd [#allocation3], 4294967040 }
  0x49   :  { %723 = dma.done.wait [#allocation6], 1152  }
  0x4a   :  { %724 = vsyncadd [#allocation6], 4294966144 }
  0x4b   :  { %725 = dma.done.wait [#allocation9], 1024  }
  0x4c   :  { %726 = vsyncadd [#allocation9], 4294966272  ;;  %v737_v0 = vmov 0.0   ;;  %vm91_vm0 = vcmask 64512   ;;  %v83_v1 = vld [vmem:[#allocation5] sm:$0xff]  ;;  %v81_v2 = vld [vmem:[#allocation2] sm:$0xff]  ;;  %v409_v40 = vlaneseq }
  0x4d   :  { %541 = vmatprep.subr.bf16.mxu1 %v737_v0  ;;  %v82_v3 = vld [vmem:[#allocation2 + $0x8] sm:$0xff]  ;;  %536 = vmatprep.subr.mxu0 %v83_v1  ;;  %v595_v4 = vld [vmem:[#allocation7] sm:$0xff]   ;;  %v596_v5 = vld [vmem:[#allocation7 + $0x8] sm:$0xff]   ;;  %vm738_vm1 = vmmov 0   ;;  %v739_v38 = vmov 1966171168  }
  0x4e   :  { %538 = vmatprep.mubr.msk.f32.mxu0 %vm91_vm0, %v81_v2  ;;  %537 = vmatpush3.msra.mxu0 %v83_v1  ;;  %v597_v6 = vld [vmem:[#allocation7 + $0x10] sm:$0xff]   ;;  %v598_v7 = vld [vmem:[#allocation7 + $0x18] sm:$0xff]   ;;  %v599_v8 = vld [vmem:[#allocation7 + $0x20] sm:$0xff]   ;;  %v407_v39 = vunpack.c.l.s4 %v739_v38  ;;  %v410_v42 = vshrl.u32 %v409_v40, 7 }
  0x4f   :  { %539 = vmatmul.mubr.msk.f32.vlgmr.msra.gmra.mrb[0].mxu0 %vm91_vm0, %v82_v3  ;;  %542 = vmatpush3.bf16.msra.mxu1 %v595_v4  ;;  %v600_v9 = vld [vmem:[#allocation7 + $0x28] sm:$0xff]   ;;  %v601_v10 = vld [vmem:[#allocation7 + $0x30] sm:$0xff]   ;;  %v602_v11 = vld [vmem:[#allocation7 + $0x38] sm:$0xff]  }
  0x50   :  { %543 = vmatprep.subr.bf16.mxu1 %v737_v0  ;;  %561 = vmatprep.subr.bf16.mxu0 %v737_v0  ;;  %v603_v12 = vld [vmem:[#allocation8] sm:$0xff]   ;;  %v604_v13 = vld [vmem:[#allocation8 + $0x8] sm:$0xff]   ;;  %v605_v14 = vld [vmem:[#allocation8 + $0x10] sm:$0xff]   ;;  %v408_v41 = vunpack.c.0.s8 %v407_v39 }
  0x51   :  { %557 = vmatprep.mubr.msk.bf16.mxu1 %vm738_vm1, %v737_v0  ;;  %577 = vmatprep.mubr.msk.bf16.mxu0 %vm738_vm1, %v737_v0  ;;  %v606_v15 = vld [vmem:[#allocation8 + $0x18] sm:$0xff]   ;;  %v607_v16 = vld [vmem:[#allocation8 + $0x20] sm:$0xff]   ;;  %v608_v17 = vld [vmem:[#allocation8 + $0x28] sm:$0xff]  }
  0x52   :  { %562 = vmatpush3.bf16.msra.mxu0 %v603_v12  ;;  %v489_v18 = vld [vmem:[%s880_s2] ss:$0 sm:$0xff]  ;;  %v609_v26 = vld [vmem:[#allocation8 + $0x30] sm:$0xff]   ;;  %v610_v27 = vld [vmem:[#allocation8 + $0x38] sm:$0xff]   ;;  %v411_v49 = vsub.s32 %v408_v41, %v410_v42 }
  0x53   :  { %544 = vmatpush3.bf16.msra.mxu1 %v596_v5  ;;  %563 = vmatprep.subr.bf16.mxu0 %v737_v0  ;;  %v492_v28 = vld [vmem:[%s882_s4] ss:$0 sm:$0xff] }
  0x54   :  { %545 = vmatprep.subr.bf16.mxu1 %v737_v0  ;;  %v501_v43 = vld [vmem:[%s884_s6] ss:$0 sm:$0xff] }
  0x56   :  { %564 = vmatpush3.bf16.msra.mxu0 %v604_v13 }
  0x57   :  { %546 = vmatpush3.bf16.msra.mxu1 %v597_v6  ;;  %565 = vmatprep.subr.bf16.mxu0 %v737_v0 }
  0x58   :  { %547 = vmatprep.subr.bf16.mxu1 %v737_v0 }
  0x5a   :  { %566 = vmatpush3.bf16.msra.mxu0 %v605_v14 }
  0x5b   :  { %548 = vmatpush3.bf16.msra.mxu1 %v598_v7  ;;  %567 = vmatprep.subr.bf16.mxu0 %v737_v0 }
  0x5c   :  { %549 = vmatprep.subr.bf16.mxu1 %v737_v0 }
  0x5e   :  { %568 = vmatpush3.bf16.msra.mxu0 %v606_v15 }
  0x5f   :  { %550 = vmatpush3.bf16.msra.mxu1 %v599_v8  ;;  %569 = vmatprep.subr.bf16.mxu0 %v737_v0 }
  0x60   :  { %551 = vmatprep.subr.bf16.mxu1 %v737_v0 }
  0x62   :  { %570 = vmatpush3.bf16.msra.mxu0 %v607_v16 }
  0x63   :  { %552 = vmatpush3.bf16.msra.mxu1 %v600_v9  ;;  %571 = vmatprep.subr.bf16.mxu0 %v737_v0 }
  0x64   :  { %553 = vmatprep.subr.bf16.mxu1 %v737_v0 }
  0x66   :  { %572 = vmatpush3.bf16.msra.mxu0 %v608_v17 }
  0x67   :  { %554 = vmatpush3.bf16.msra.mxu1 %v601_v10  ;;  %573 = vmatprep.subr.bf16.mxu0 %v737_v0 }
  0x68   :  { %555 = vmatprep.subr.bf16.mxu1 %v737_v0 }
  0x6a   :  { %574 = vmatpush3.bf16.msra.mxu0 %v609_v26 }
  0x6b   :  { %556 = vmatpush3.bf16.msra.mxu1 %v602_v11  ;;  %575 = vmatprep.subr.bf16.mxu0 %v737_v0 }
  0x6e   :  { %576 = vmatpush3.bf16.msra.mxu0 %v610_v27 }
 0x122   :  { %v540_v19 = vpop.f32.mrb[0].mxu0 }
 0x123   :  { %v170_v20 = vadd.f32 %v540_v19, %v489_v18  ;;  %v164_v21 = vpop.f32.mrb[1].mxu0 }
 0x124   :  { %v165_v22 = vadd.f32 %v489_v18, %v164_v21 }
 0x125   :  { %v174_v23 = vmax.f32 %v170_v20, 0.0 }
 0x126   :  { %v173_v24 = vmax.f32 %v165_v22, 0.0 }
 0x128   :  { %v175_v25 = vpack.c.bf16 %v174_v23, %v173_v24 }
 0x12a   :  { %558 = vmatmul.mubr.bf16.vlgmr.msra.gmra.mrb[0].mxu1 %v175_v25 }
 0x1fd   :  { %v281_v29 = vpop.f32.mrb[0].mxu1 }
 0x1fe   :  { %v282_v30 = vadd.f32 %v492_v28, %v281_v29  ;;  %v559_v31 = vpop.f32.mrb[1].mxu1 }
 0x1ff   :  { %v284_v32 = vpop.f32.mrb[2].mxu1 }
 0x200   :  { %v285_v33 = vadd.f32 %v492_v28, %v284_v32  ;;  %v560_v34 = vpop.f32.mrb[3].mxu1  ;;  %v288_v35 = vmax.f32 %v282_v30, 0.0 }
 0x202   :  { %v289_v36 = vmax.f32 %v285_v33, 0.0 }
 0x204   :  { %v290_v37 = vpack.c.bf16 %v289_v36, %v288_v35 }
 0x206   :  { %578 = vmatmul.mubr.bf16.vlgmr.msra.gmra.mrb[4].mxu0 %v290_v37 }
 0x2d9   :  { %v396_v44 = vpop.f32.mrb[4].mxu0 }
 0x2da   :  { %v579_v45 = vpop.f32.mrb[5].mxu0  ;;  %v397_v47 = vadd.f32 %v501_v43, %v396_v44 }
 0x2db   :  { %v399_v46 = vpop.f32.mrb[6].mxu0 }
 0x2dc   :  { %v400_v48 = vadd.f32 %v501_v43, %v399_v46  ;;  %v580_v50 = vpop.f32.mrb[7].mxu0 }
 0x2de   :  { %v403_v51 = vpack.c.bf16 %v400_v48, %v397_v47  ;;  %v510_v52 = vpack.c.bf16 %v400_v48, %v400_v48 }
 0x2e0   :  { %v412_v53 = vrot.slane %v403_v51, %v411_v49  ;;  %v419_v54 = vrot.slane %v510_v52, %v411_v49 }
 0x2e2   :  { %v420_v55 = vcombine.high %v412_v53, %v412_v53  ;;  %v421_v56 = vcombine.high %v419_v54, %v419_v54  ;;  %v428_v57 = vrot.slane %v412_v53, %v411_v49  ;;  %v435_v58 = vrot.slane %v419_v54, %v411_v49  ;;  %511 = vst.sshfl [vmem:[#allocation10] sm:$0x1 pattern:$0x73625140] %v412_v53 }
 0x2e3   :  { %513 = vst.sshfl [vmem:[#allocation10 + $0x4] sm:$0x1 pattern:$0x73625140] %v419_v54 }
 0x2e4   :  { %v442_v59 = vrot.slane %v420_v55, %v411_v49  ;;  %v449_v60 = vrot.slane %v421_v56, %v411_v49  ;;  %v450_v61 = vcombine.high %v428_v57, %v428_v57  ;;  %v451_v62 = vcombine.high %v435_v58, %v435_v58  ;;  %512 = vst.sshfl [vmem:[#allocation10 + $0x1] sm:$0x1 pattern:$0x73625140] %v420_v55 }
 0x2e5   :  { %514 = vst.sshfl [vmem:[#allocation10 + $0x5] sm:$0x1 pattern:$0x73625140] %v421_v56 }
 0x2e6   :  { %v452_v63 = vcombine.high %v442_v59, %v442_v59  ;;  %v453_v0 = vcombine.high %v449_v60, %v449_v60  ;;  %464 = vst [vmem:[#allocation10 + $0x2] sm:$0x1] %v450_v61  ;;  %468 = vst [vmem:[#allocation10 + $0x6] sm:$0x1] %v451_v62 }
 0x2e8   :  { %465 = vst [vmem:[#allocation10 + $0x3] sm:$0x1] %v452_v63  ;;  %469 = vst [vmem:[#allocation10 + $0x7] sm:$0x1] %v453_v0 }
 0x2e9   :  { %474 = vsyncadd [#allocation4], 112  ;;  %s740_s4 = smov [#allocation10]  }
 0x2ea   :  { %s475_s6 = sshll.u32 %s740_s4, 4  ;;  %s476_s6 = int_to_ptr.vmem [resolvable:$true] %s475_s6 }
 0x2eb   :  { %s699_s9 = scalar_lea.vmem %s476_s6, 16  ;;  %s703_s10 = scalar_lea.vmem %s476_s6, 128 }
 0x2ec   :  { %p700_p4 = scmp.ne.s32.totalorder %s476_s6, %s699_s9  ;;  %p704_p5 = scmp.lt.s32.totalorder %s476_s6, %s476_s6 }
 0x2ed   :  { %p705_p6 = scmp.lt.s32.totalorder %s703_s10, %s699_s9 }
 0x2ef   :  { %p706_p7 = por %p705_p6, %p704_p5 }
 0x2f1   :  { %p707_p8 = pnand %p706_p7, %p700_p4 }
 0x2f3   :  { %710 = shalt.err (!%p707_p8)
}
 0x2f4   :  { %s711_s13 = scalar_lea.hbm %s885_s7, 16 }
 0x2f5   :  { %p712_p9 = scmp.ne.s32.totalorder %s885_s7, %s711_s13  ;;  %p715_p10 = scmp.lt.u32.totalorder %s711_s13, %s885_s7 }
 0x2f7   :  { %p717_p11 = pnand %p715_p10, %p712_p9 }
 0x2f9   :  { %720 = shalt.err (!%p717_p11)
}
 0x2fa   :  { %s741_s16 = smov 16   ;;  %s742_s17 = smov 1  }
 0x2fb   :  { %481 = dma.vmem_to_hbm [thread:$0]  %s476_s6, 16, %s885_s7, [#allocation4], %s741_s16, %s741_s16, %s742_s17  }
 0x2fc   :  { %727 = dma.done.wait [#allocation4], 128  }
 0x2fd   :  { %728 = vsyncadd [#allocation4], 4294967168 }
 0x2fe   :  { %485 = vsyncpa [#allocation3], 1 }
 0x2ff   :  { %486 = vsyncpa [#allocation6], 1 }
 0x300   :  { %487 = vsyncpa [#allocation9], 1 }
 0x301   :  { %488 = vsyncpa [#allocation4], 1 }

</bundles_post_ra>
